<compile_context>
chip_gen: v7x
topology: tpu7x:2x2x1
jax: 0.10.0
libtpu: 0.0.40
codegen_flags: <defaults>
</compile_context>

<pallas_src>
import jax
import jax.numpy as jnp
from jax.experimental import pallas as pl
from jax.experimental.pallas import tpu as pltpu


def _fused_conv1x1_kernel(w1_ref, w2_ref, x_ref, o_ref):
    # w1_ref, w2_ref: (C*C,) f32 in SMEM, row-major (out_ch, in_ch)
    # x_ref, o_ref:   (N, C, HW) in VMEM (whole batch, single invocation)
    _, c, _ = x_ref.shape
    x = x_ref[...].astype(jnp.float32)               # (N, C, HW), f32 accum

    for o in range(c):
        acc = None
        for i in range(c):
            # Fold Wc[o, i] = sum_m W2[o, m] * W1[m, i] from SMEM scalars.
            wc_oi = w2_ref[o * c + 0] * w1_ref[0 * c + i]
            for m in range(1, c):
                wc_oi = wc_oi + w2_ref[o * c + m] * w1_ref[m * c + i]
            # Scalar-splat FMA over the (N, HW) slab for input channel i.
            term = wc_oi * x[:, i, :]
            acc = term if acc is None else acc + term
        # Full-lane-width (HW = 256) store of output channel o.
        o_ref[:, o, :] = acc.astype(o_ref.dtype)


def basic_model_forward(x_nchw, w1, w2):
    """x_nchw: (N, C, H, W); w1, w2: (C_out, C_in, 1, 1) like PyTorch Conv2d."""
    N, C, H, W = x_nchw.shape
    HW = H * W

    # Flatten 1x1-conv weights to 1D f32 for SMEM (1D (9,) pads to 64 B,
    # vs ~4 KiB for a padded 2D (3,3) tile).
    w1_flat = w1[:, :, 0, 0].reshape(C * C).astype(jnp.float32)
    w2_flat = w2[:, :, 0, 0].reshape(C * C).astype(jnp.float32)

    # NCHW is already (channel-major, HW-minor): pure reshape, no transpose.
    x3 = x_nchw.reshape(N, C, HW)

    out3 = pl.pallas_call(
        _fused_conv1x1_kernel,
        out_shape=jax.ShapeDtypeStruct((N, C, HW), x_nchw.dtype),
        # No grid: single invocation over the whole batch; block shapes equal
        # full array dims so the (8, 128) tiling rule is trivially satisfied.
        in_specs=[
            pl.BlockSpec(memory_space=pltpu.MemorySpace.SMEM),   # w1 scalars
            pl.BlockSpec(memory_space=pltpu.MemorySpace.SMEM),   # w2 scalars
            pl.BlockSpec(memory_space=pltpu.MemorySpace.VMEM),   # x (N,C,HW)
        ],
        out_specs=pl.BlockSpec(memory_space=pltpu.MemorySpace.VMEM),
    )(w1_flat, w2_flat, x3)

    return out3.reshape(N, C, H, W)


if __name__ == "__main__":
    # Module defaults: num_channels=3, kernel_size=1, no bias.
    N, C, H, W = 2, 3, 16, 16

    key = jax.random.PRNGKey(0)
    kx, k1, k2 = jax.random.split(key, 3)

    x = jax.random.normal(kx, (N, C, H, W), dtype=jnp.float32)
    # Deterministic Conv2d-style weights: shape (C_out, C_in, 1, 1).
    bound = 1.0 / (C ** 0.5)  # kaiming-uniform-like bound for a 1x1 conv
    w1 = jax.random.uniform(k1, (C, C, 1, 1), dtype=jnp.float32,
                            minval=-bound, maxval=bound)
    w2 = jax.random.uniform(k2, (C, C, 1, 1), dtype=jnp.float32,
                            minval=-bound, maxval=bound)

    out = basic_model_forward(x, w1, w2)
    out = jax.block_until_ready(out)

    # Reference: the two-step 1x1 convs as channel einsums (matches PyTorch).
    ref = jnp.einsum("oi,nihw->nohw", w2[:, :, 0, 0],
                     jnp.einsum("oi,nihw->nohw", w1[:, :, 0, 0], x))
    assert out.shape == (N, C, H, W)
    assert jnp.allclose(out, ref, atol=1e-5, rtol=1e-5)

    print("KERNEL_OK")
</pallas_src>

<mosaic_0001>
module attributes {stable_mosaic.version = 11 : i64} {
  func.func @_fused_conv1x1_kernel(%arg0: memref<9xf32, #tpu.memory_space<smem>>, %arg1: memref<9xf32, #tpu.memory_space<smem>>, %arg2: memref<2x3x256xf32, #tpu.memory_space<vmem>>, %arg3: memref<2x3x256xf32, #tpu.memory_space<vmem>>) attributes {dimension_semantics = [], scalar_prefetch = 0 : i64, scratch_operands = 0 : i64, tpu.core_type = #tpu.core_type<tc>} {
    %c0 = arith.constant 0 : index
    %c0_0 = arith.constant 0 : index
    %c0_1 = arith.constant 0 : index
    %0 = vector.load %arg2[%c0, %c0_0, %c0_1] : memref<2x3x256xf32, #tpu.memory_space<vmem>>, vector<2x3x256xf32>
    %c0_2 = arith.constant 0 : index
    %1 = memref.load %arg1[%c0_2] : memref<9xf32, #tpu.memory_space<smem>>
    %c0_3 = arith.constant 0 : index
    %2 = memref.load %arg0[%c0_3] : memref<9xf32, #tpu.memory_space<smem>>
    %3 = arith.mulf %1, %2 : f32
    %c1 = arith.constant 1 : index
    %4 = memref.load %arg1[%c1] : memref<9xf32, #tpu.memory_space<smem>>
    %c3 = arith.constant 3 : index
    %5 = memref.load %arg0[%c3] : memref<9xf32, #tpu.memory_space<smem>>
    %6 = arith.mulf %4, %5 : f32
    %7 = arith.addf %3, %6 : f32
    %c2 = arith.constant 2 : index
    %8 = memref.load %arg1[%c2] : memref<9xf32, #tpu.memory_space<smem>>
    %c6 = arith.constant 6 : index
    %9 = memref.load %arg0[%c6] : memref<9xf32, #tpu.memory_space<smem>>
    %10 = arith.mulf %8, %9 : f32
    %11 = arith.addf %7, %10 : f32
    %12 = vector.extract_strided_slice %0 {offsets = [0, 0, 0], sizes = [2, 1, 256], strides = [1, 1, 1]} : vector<2x3x256xf32> to vector<2x1x256xf32>
    %13 = vector.shape_cast %12 : vector<2x1x256xf32> to vector<2x256xf32>
    %14 = vector.broadcast %11 : f32 to vector<2x256xf32>
    %15 = arith.mulf %14, %13 : vector<2x256xf32>
    %c0_4 = arith.constant 0 : index
    %16 = memref.load %arg1[%c0_4] : memref<9xf32, #tpu.memory_space<smem>>
    %c1_5 = arith.constant 1 : index
    %17 = memref.load %arg0[%c1_5] : memref<9xf32, #tpu.memory_space<smem>>
    %18 = arith.mulf %16, %17 : f32
    %c1_6 = arith.constant 1 : index
    %19 = memref.load %arg1[%c1_6] : memref<9xf32, #tpu.memory_space<smem>>
    %c4 = arith.constant 4 : index
    %20 = memref.load %arg0[%c4] : memref<9xf32, #tpu.memory_space<smem>>
    %21 = arith.mulf %19, %20 : f32
    %22 = arith.addf %18, %21 : f32
    %c2_7 = arith.constant 2 : index
    %23 = memref.load %arg1[%c2_7] : memref<9xf32, #tpu.memory_space<smem>>
    %c7 = arith.constant 7 : index
    %24 = memref.load %arg0[%c7] : memref<9xf32, #tpu.memory_space<smem>>
    %25 = arith.mulf %23, %24 : f32
    %26 = arith.addf %22, %25 : f32
    %27 = vector.extract_strided_slice %0 {offsets = [0, 1, 0], sizes = [2, 1, 256], strides = [1, 1, 1]} : vector<2x3x256xf32> to vector<2x1x256xf32>
    %28 = vector.shape_cast %27 : vector<2x1x256xf32> to vector<2x256xf32>
    %29 = vector.broadcast %26 : f32 to vector<2x256xf32>
    %30 = arith.mulf %29, %28 : vector<2x256xf32>
    %31 = arith.addf %15, %30 : vector<2x256xf32>
    %c0_8 = arith.constant 0 : index
    %32 = memref.load %arg1[%c0_8] : memref<9xf32, #tpu.memory_space<smem>>
    %c2_9 = arith.constant 2 : index
    %33 = memref.load %arg0[%c2_9] : memref<9xf32, #tpu.memory_space<smem>>
    %34 = arith.mulf %32, %33 : f32
    %c1_10 = arith.constant 1 : index
    %35 = memref.load %arg1[%c1_10] : memref<9xf32, #tpu.memory_space<smem>>
    %c5 = arith.constant 5 : index
    %36 = memref.load %arg0[%c5] : memref<9xf32, #tpu.memory_space<smem>>
    %37 = arith.mulf %35, %36 : f32
    %38 = arith.addf %34, %37 : f32
    %c2_11 = arith.constant 2 : index
    %39 = memref.load %arg1[%c2_11] : memref<9xf32, #tpu.memory_space<smem>>
    %c8 = arith.constant 8 : index
    %40 = memref.load %arg0[%c8] : memref<9xf32, #tpu.memory_space<smem>>
    %41 = arith.mulf %39, %40 : f32
    %42 = arith.addf %38, %41 : f32
    %43 = vector.extract_strided_slice %0 {offsets = [0, 2, 0], sizes = [2, 1, 256], strides = [1, 1, 1]} : vector<2x3x256xf32> to vector<2x1x256xf32>
    %44 = vector.shape_cast %43 : vector<2x1x256xf32> to vector<2x256xf32>
    %45 = vector.broadcast %42 : f32 to vector<2x256xf32>
    %46 = arith.mulf %45, %44 : vector<2x256xf32>
    %47 = arith.addf %31, %46 : vector<2x256xf32>
    %c0_12 = arith.constant 0 : index
    %c0_13 = arith.constant 0 : index
    %c0_14 = arith.constant 0 : index
    %48 = vector.load %arg3[%c0_12, %c0_13, %c0_14] : memref<2x3x256xf32, #tpu.memory_space<vmem>>, vector<2x1x256xf32>
    %49 = vector.shape_cast %48 : vector<2x1x256xf32> to vector<2x256xf32>
    %50 = vector.shape_cast %47 : vector<2x256xf32> to vector<2x1x256xf32>
    tpu.vector_store %arg3[%c0_12, %c0_13, %c0_14], %50 {strides = array<i32>} : memref<2x3x256xf32, #tpu.memory_space<vmem>>, vector<2x1x256xf32>,
    %c3_15 = arith.constant 3 : index
    %51 = memref.load %arg1[%c3_15] : memref<9xf32, #tpu.memory_space<smem>>
    %c0_16 = arith.constant 0 : index
    %52 = memref.load %arg0[%c0_16] : memref<9xf32, #tpu.memory_space<smem>>
    %53 = arith.mulf %51, %52 : f32
    %c4_17 = arith.constant 4 : index
    %54 = memref.load %arg1[%c4_17] : memref<9xf32, #tpu.memory_space<smem>>
    %c3_18 = arith.constant 3 : index
    %55 = memref.load %arg0[%c3_18] : memref<9xf32, #tpu.memory_space<smem>>
    %56 = arith.mulf %54, %55 : f32
    %57 = arith.addf %53, %56 : f32
    %c5_19 = arith.constant 5 : index
    %58 = memref.load %arg1[%c5_19] : memref<9xf32, #tpu.memory_space<smem>>
    %c6_20 = arith.constant 6 : index
    %59 = memref.load %arg0[%c6_20] : memref<9xf32, #tpu.memory_space<smem>>
    %60 = arith.mulf %58, %59 : f32
    %61 = arith.addf %57, %60 : f32
    %62 = vector.extract_strided_slice %0 {offsets = [0, 0, 0], sizes = [2, 1, 256], strides = [1, 1, 1]} : vector<2x3x256xf32> to vector<2x1x256xf32>
    %63 = vector.shape_cast %62 : vector<2x1x256xf32> to vector<2x256xf32>
    %64 = vector.broadcast %61 : f32 to vector<2x256xf32>
    %65 = arith.mulf %64, %63 : vector<2x256xf32>
    %c3_21 = arith.constant 3 : index
    %66 = memref.load %arg1[%c3_21] : memref<9xf32, #tpu.memory_space<smem>>
    %c1_22 = arith.constant 1 : index
    %67 = memref.load %arg0[%c1_22] : memref<9xf32, #tpu.memory_space<smem>>
    %68 = arith.mulf %66, %67 : f32
    %c4_23 = arith.constant 4 : index
    %69 = memref.load %arg1[%c4_23] : memref<9xf32, #tpu.memory_space<smem>>
    %c4_24 = arith.constant 4 : index
    %70 = memref.load %arg0[%c4_24] : memref<9xf32, #tpu.memory_space<smem>>
    %71 = arith.mulf %69, %70 : f32
    %72 = arith.addf %68, %71 : f32
    %c5_25 = arith.constant 5 : index
    %73 = memref.load %arg1[%c5_25] : memref<9xf32, #tpu.memory_space<smem>>
    %c7_26 = arith.constant 7 : index
    %74 = memref.load %arg0[%c7_26] : memref<9xf32, #tpu.memory_space<smem>>
    %75 = arith.mulf %73, %74 : f32
    %76 = arith.addf %72, %75 : f32
    %77 = vector.extract_strided_slice %0 {offsets = [0, 1, 0], sizes = [2, 1, 256], strides = [1, 1, 1]} : vector<2x3x256xf32> to vector<2x1x256xf32>
    %78 = vector.shape_cast %77 : vector<2x1x256xf32> to vector<2x256xf32>
    %79 = vector.broadcast %76 : f32 to vector<2x256xf32>
    %80 = arith.mulf %79, %78 : vector<2x256xf32>
    %81 = arith.addf %65, %80 : vector<2x256xf32>
    %c3_27 = arith.constant 3 : index
    %82 = memref.load %arg1[%c3_27] : memref<9xf32, #tpu.memory_space<smem>>
    %c2_28 = arith.constant 2 : index
    %83 = memref.load %arg0[%c2_28] : memref<9xf32, #tpu.memory_space<smem>>
    %84 = arith.mulf %82, %83 : f32
    %c4_29 = arith.constant 4 : index
    %85 = memref.load %arg1[%c4_29] : memref<9xf32, #tpu.memory_space<smem>>
    %c5_30 = arith.constant 5 : index
    %86 = memref.load %arg0[%c5_30] : memref<9xf32, #tpu.memory_space<smem>>
    %87 = arith.mulf %85, %86 : f32
    %88 = arith.addf %84, %87 : f32
    %c5_31 = arith.constant 5 : index
    %89 = memref.load %arg1[%c5_31] : memref<9xf32, #tpu.memory_space<smem>>
    %c8_32 = arith.constant 8 : index
    %90 = memref.load %arg0[%c8_32] : memref<9xf32, #tpu.memory_space<smem>>
    %91 = arith.mulf %89, %90 : f32
    %92 = arith.addf %88, %91 : f32
    %93 = vector.extract_strided_slice %0 {offsets = [0, 2, 0], sizes = [2, 1, 256], strides = [1, 1, 1]} : vector<2x3x256xf32> to vector<2x1x256xf32>
    %94 = vector.shape_cast %93 : vector<2x1x256xf32> to vector<2x256xf32>
    %95 = vector.broadcast %92 : f32 to vector<2x256xf32>
    %96 = arith.mulf %95, %94 : vector<2x256xf32>
    %97 = arith.addf %81, %96 : vector<2x256xf32>
    %c0_33 = arith.constant 0 : index
    %c1_34 = arith.constant 1 : index
    %c0_35 = arith.constant 0 : index
    %98 = vector.load %arg3[%c0_33, %c1_34, %c0_35] : memref<2x3x256xf32, #tpu.memory_space<vmem>>, vector<2x1x256xf32>
    %99 = vector.shape_cast %98 : vector<2x1x256xf32> to vector<2x256xf32>
    %100 = vector.shape_cast %97 : vector<2x256xf32> to vector<2x1x256xf32>
    tpu.vector_store %arg3[%c0_33, %c1_34, %c0_35], %100 {strides = array<i32>} : memref<2x3x256xf32, #tpu.memory_space<vmem>>, vector<2x1x256xf32>,
    %c6_36 = arith.constant 6 : index
    %101 = memref.load %arg1[%c6_36] : memref<9xf32, #tpu.memory_space<smem>>
    %c0_37 = arith.constant 0 : index
    %102 = memref.load %arg0[%c0_37] : memref<9xf32, #tpu.memory_space<smem>>
    %103 = arith.mulf %101, %102 : f32
    %c7_38 = arith.constant 7 : index
    %104 = memref.load %arg1[%c7_38] : memref<9xf32, #tpu.memory_space<smem>>
    %c3_39 = arith.constant 3 : index
    %105 = memref.load %arg0[%c3_39] : memref<9xf32, #tpu.memory_space<smem>>
    %106 = arith.mulf %104, %105 : f32
    %107 = arith.addf %103, %106 : f32
    %c8_40 = arith.constant 8 : index
    %108 = memref.load %arg1[%c8_40] : memref<9xf32, #tpu.memory_space<smem>>
    %c6_41 = arith.constant 6 : index
    %109 = memref.load %arg0[%c6_41] : memref<9xf32, #tpu.memory_space<smem>>
    %110 = arith.mulf %108, %109 : f32
    %111 = arith.addf %107, %110 : f32
    %112 = vector.extract_strided_slice %0 {offsets = [0, 0, 0], sizes = [2, 1, 256], strides = [1, 1, 1]} : vector<2x3x256xf32> to vector<2x1x256xf32>
    %113 = vector.shape_cast %112 : vector<2x1x256xf32> to vector<2x256xf32>
    %114 = vector.broadcast %111 : f32 to vector<2x256xf32>
    %115 = arith.mulf %114, %113 : vector<2x256xf32>
    %c6_42 = arith.constant 6 : index
    %116 = memref.load %arg1[%c6_42] : memref<9xf32, #tpu.memory_space<smem>>
    %c1_43 = arith.constant 1 : index
    %117 = memref.load %arg0[%c1_43] : memref<9xf32, #tpu.memory_space<smem>>
    %118 = arith.mulf %116, %117 : f32
    %c7_44 = arith.constant 7 : index
    %119 = memref.load %arg1[%c7_44] : memref<9xf32, #tpu.memory_space<smem>>
    %c4_45 = arith.constant 4 : index
    %120 = memref.load %arg0[%c4_45] : memref<9xf32, #tpu.memory_space<smem>>
    %121 = arith.mulf %119, %120 : f32
    %122 = arith.addf %118, %121 : f32
    %c8_46 = arith.constant 8 : index
    %123 = memref.load %arg1[%c8_46] : memref<9xf32, #tpu.memory_space<smem>>
    %c7_47 = arith.constant 7 : index
    %124 = memref.load %arg0[%c7_47] : memref<9xf32, #tpu.memory_space<smem>>
    %125 = arith.mulf %123, %124 : f32
    %126 = arith.addf %122, %125 : f32
    %127 = vector.extract_strided_slice %0 {offsets = [0, 1, 0], sizes = [2, 1, 256], strides = [1, 1, 1]} : vector<2x3x256xf32> to vector<2x1x256xf32>
    %128 = vector.shape_cast %127 : vector<2x1x256xf32> to vector<2x256xf32>
    %129 = vector.broadcast %126 : f32 to vector<2x256xf32>
    %130 = arith.mulf %129, %128 : vector<2x256xf32>
    %131 = arith.addf %115, %130 : vector<2x256xf32>
    %c6_48 = arith.constant 6 : index
    %132 = memref.load %arg1[%c6_48] : memref<9xf32, #tpu.memory_space<smem>>
    %c2_49 = arith.constant 2 : index
    %133 = memref.load %arg0[%c2_49] : memref<9xf32, #tpu.memory_space<smem>>
    %134 = arith.mulf %132, %133 : f32
    %c7_50 = arith.constant 7 : index
    %135 = memref.load %arg1[%c7_50] : memref<9xf32, #tpu.memory_space<smem>>
    %c5_51 = arith.constant 5 : index
    %136 = memref.load %arg0[%c5_51] : memref<9xf32, #tpu.memory_space<smem>>
    %137 = arith.mulf %135, %136 : f32
    %138 = arith.addf %134, %137 : f32
    %c8_52 = arith.constant 8 : index
    %139 = memref.load %arg1[%c8_52] : memref<9xf32, #tpu.memory_space<smem>>
    %c8_53 = arith.constant 8 : index
    %140 = memref.load %arg0[%c8_53] : memref<9xf32, #tpu.memory_space<smem>>
    %141 = arith.mulf %139, %140 : f32
    %142 = arith.addf %138, %141 : f32
    %143 = vector.extract_strided_slice %0 {offsets = [0, 2, 0], sizes = [2, 1, 256], strides = [1, 1, 1]} : vector<2x3x256xf32> to vector<2x1x256xf32>
    %144 = vector.shape_cast %143 : vector<2x1x256xf32> to vector<2x256xf32>
    %145 = vector.broadcast %142 : f32 to vector<2x256xf32>
    %146 = arith.mulf %145, %144 : vector<2x256xf32>
    %147 = arith.addf %131, %146 : vector<2x256xf32>
    %c0_54 = arith.constant 0 : index
    %c2_55 = arith.constant 2 : index
    %c0_56 = arith.constant 0 : index
    %148 = vector.load %arg3[%c0_54, %c2_55, %c0_56] : memref<2x3x256xf32, #tpu.memory_space<vmem>>, vector<2x1x256xf32>
    %149 = vector.shape_cast %148 : vector<2x1x256xf32> to vector<2x256xf32>
    %150 = vector.shape_cast %147 : vector<2x256xf32> to vector<2x1x256xf32>
    tpu.vector_store %arg3[%c0_54, %c2_55, %c0_56], %150 {strides = array<i32>} : memref<2x3x256xf32, #tpu.memory_space<vmem>>, vector<2x1x256xf32>,
    return
  }
}

</mosaic_0001>

<bundles_post_ra>
// kernel: tpu_custom_call.1
= control target key start
LH: loop header
LB: loop body
LE: loop exit
PB: predicated region body
PF: predicated region fallthrough
CT: control target
= control target key end

     0   :  { %8 = vsyncpa [#allocation3], 0  ;;  %s601_s0 = inlined_call_operand.vmem [shape: f32[9], index: 0, kind: input, shape index: {}]   ;;  %s602_s1 = inlined_call_operand.vmem [shape: f32[9], index: 1, kind: input, shape index: {}]   ;;  %s603_s2 = inlined_call_operand.vmem [shape: f32[2,3,256], index: 2, kind: input, shape index: {}]   ;;  %s604_s3 = inlined_call_operand.vmem [shape: f32[2,3,256], index: 3, kind: output, shape index: {}]  }
   0x1   :  { %s16_s14 = sshll.u32 %s601_s0, 4  ;;  %s17_s14 = int_to_ptr.vmem [resolvable:$true] %s16_s14 }
   0x2   :  { %9 = vsyncpa [#allocation5], 0  ;;  %s26_s17 = sshll.u32 %s602_s1, 4  ;;  %s378_s18 = scalar_lea.vmem %s17_s14, 16  ;;  %s27_s17 = int_to_ptr.vmem [resolvable:$true] %s26_s17 }
   0x3   :  { %p379_p0 = scmp.ne.s32.totalorder %s17_s14, %s378_s18  ;;  %p383_p1 = scmp.lt.s32.totalorder %s17_s14, %s17_s14 }
   0x4   :  { %p384_p2 = scmp.lt.s32.totalorder %s378_s18, %s378_s18 }
   0x6   :  { %p385_p3 = por %p384_p2, %p383_p1 }
   0x8   :  { %p386_p4 = pnand %p385_p3, %p379_p0 }
   0xa   :  { %389 = shalt.err (!%p386_p4)
}
   0xb   :  { %s406_s19 = smov [#allocation2]   ;;  %s390_s20 = scalar_lea.vmem %s27_s17, 16 }
   0xc   :  { %19 = dma.vmem_to_smem %s17_s14, 16, %s406_s19, [#allocation3]  }
   0xd   :  { %p391_p5 = scmp.ne.s32.totalorder %s27_s17, %s390_s20  ;;  %p395_p6 = scmp.lt.s32.totalorder %s27_s17, %s27_s17 }
   0xe   :  { %p396_p7 = scmp.lt.s32.totalorder %s390_s20, %s390_s20 }
  0x10   :  { %p397_p8 = por %p396_p7, %p395_p6 }
  0x12   :  { %p398_p9 = pnand %p397_p8, %p391_p5 }
  0x14   :  { %401 = shalt.err (!%p398_p9)
}
  0x15   :  { %s407_s0 = smov [#allocation4]  }
  0x16   :  { %29 = dma.vmem_to_smem %s27_s17, 16, %s407_s0, [#allocation5]  }
  0x17   :  { %402 = dma.done.wait [#allocation3], 16  }
  0x18   :  { %403 = vsyncadd [#allocation3], 4294967280 }
  0x19   :  { %404 = dma.done.wait [#allocation5], 16  }
  0x1a   :  { %405 = vsyncadd [#allocation5], 4294967280 }
  0x1b   :  { %38 = sfence }
  0x1c   :  { %s435_s1 = sld [smem:[#allocation4]]  ;;  %s439_s22 = sld [smem:[#allocation4 + $0x1]]  ;;  %v486_v0 = vld [vmem:[%s603_s2] sm:$0x77]  ;;  %v408_v2 = vmov 1966171168   ;;  %v102_v4 = vlaneseq }
  0x1d   :  { %s437_s21 = sld [smem:[#allocation2]]  ;;  %s441_s23 = sld [smem:[#allocation2 + $0x3]]  ;;  %v100_v3 = vunpack.c.l.s4 %v408_v2  ;;  %v493_v5 = vld [vmem:[%s603_s2 + $0x8] sm:$0x77] }
  0x1e   :  { %s443_s24 = sld [smem:[#allocation4 + $0x2]]  ;;  %s445_s25 = sld [smem:[#allocation2 + $0x6]]  ;;  %v103_v12 = vshrl.u32 %v102_v4, 7  ;;  %vm536_vm0 = vcmp.lt.s32.totalorder %v102_v4, 256 }
  0x1f   :  { %s447_s26 = sld [smem:[#allocation2 + $0x1]]  ;;  %s449_s27 = sld [smem:[#allocation2 + $0x4]]  ;;  %v101_v11 = vunpack.c.0.s8 %v100_v3 }
  0x20   :  { %s451_s28 = sld [smem:[#allocation2 + $0x7]]  ;;  %s453_s29 = sld [smem:[#allocation2 + $0x2]] }
  0x21   :  { %s455_s30 = sld [smem:[#allocation2 + $0x5]]  ;;  %s459_s5 = sld [smem:[#allocation2 + $0x8]]  ;;  %v519_v21 = vsub.s32 %v101_v11, %v103_v12 }
  0x22   :  { %s463_s7 = sld [smem:[#allocation4 + $0x3]]  ;;  %s467_s9 = sld [smem:[#allocation4 + $0x4]] }
  0x23   :  { %s43_s4 = smul.f32 %s437_s21, %s435_s1  ;;  %s473_s13 = sld [smem:[#allocation4 + $0x5]] }
  0x24   :  { %s46_s6 = smul.f32 %s441_s23, %s439_s22  ;;  %s481_s19 = sld [smem:[#allocation4 + $0x6]] }
  0x25   :  { %s50_s8 = smul.f32 %s445_s25, %s443_s24 }
  0x26   :  { %s47_s10 = sadd.f32 %s46_s6, %s43_s4  ;;  %s56_s11 = smul.f32 %s447_s26, %s435_s1 }
  0x27   :  { %s58_s12 = smul.f32 %s449_s27, %s439_s22 }
  0x28   :  { %s51_s14 = sadd.f32 %s50_s8, %s47_s10  ;;  %s61_s15 = smul.f32 %s451_s28, %s443_s24 }
  0x29   :  { %s59_s16 = sadd.f32 %s58_s12, %s56_s11  ;;  %s77_s17 = smul.f32 %s453_s29, %s435_s1 }
  0x2a   :  { %s79_s18 = smul.f32 %s455_s30, %s439_s22  ;;  %v52_v1 = vstv %s51_s14  ;;  %s499_s12 = sld [smem:[#allocation4 + $0x7]] }
  0x2b   :  { %s62_s4 = sadd.f32 %s61_s15, %s59_s16  ;;  %s82_s6 = smul.f32 %s459_s5, %s443_s24  ;;  %v53_v7 = vmul.f32 %v52_v1, %v486_v0  ;;  %v54_v9 = vmul.f32 %v52_v1, %v493_v5 }
  0x2c   :  { %s80_s1 = sadd.f32 %s79_s18, %s77_s17  ;;  %s138_s22 = smul.f32 %s463_s7, %s437_s21 }
  0x2d   :  { %v63_v6 = vstv %s62_s4  ;;  %s141_s11 = smul.f32 %s467_s9, %s441_s23  ;;  %s511_s17 = sld [smem:[#allocation4 + $0x8]] }
  0x2e   :  { %v64_v8 = vmul.f32 %v63_v6, %v486_v0  ;;  %s83_s24 = sadd.f32 %s82_s6, %s80_s1  ;;  %v65_v10 = vmul.f32 %v63_v6, %v493_v5  ;;  %s145_s2 = smul.f32 %s473_s13, %s445_s25 }
  0x2f   :  { %s142_s14 = sadd.f32 %s141_s11, %s138_s22  ;;  %s151_s15 = smul.f32 %s463_s7, %s447_s26 }
  0x30   :  { %v333_v13 = vrot.slane %v64_v8, 9  ;;  %v84_v14 = vstv %s83_s24  ;;  %v334_v15 = vrot.slane %v65_v10, 9  ;;  %s153_s16 = smul.f32 %s467_s9, %s449_s27 }
  0x31   :  { %v85_v16 = vmul.f32 %v84_v14, %v486_v0  ;;  %v86_v17 = vmul.f32 %v84_v14, %v493_v5  ;;  %s146_s18 = sadd.f32 %s145_s2, %s142_s14  ;;  %s156_s20 = smul.f32 %s473_s13, %s451_s28 }
  0x32   :  { %v74_v18 = vadd.f32 %v333_v13, %v53_v7  ;;  %v75_v19 = vadd.f32 %v334_v15, %v54_v9  ;;  %s154_s0 = sadd.f32 %s153_s16, %s151_s15  ;;  %s172_s4 = smul.f32 %s463_s7, %s453_s29 }
  0x33   :  { %v338_v20 = vrot.slane %v85_v16, 10  ;;  %v339_v22 = vrot.slane %v86_v17, 10  ;;  %v147_v23 = vstv %s146_s18  ;;  %s174_s6 = smul.f32 %s467_s9, %s455_s30 }
  0x34   :  { %s157_s8 = sadd.f32 %s156_s20, %s154_s0  ;;  %s177_s10 = smul.f32 %s473_s13, %s459_s5  ;;  %v148_v26 = vmul.f32 %v147_v23, %v486_v0  ;;  %v149_v33 = vmul.f32 %v147_v23, %v493_v5 }
  0x35   :  { %v95_v24 = vadd.f32 %v338_v20, %v74_v18  ;;  %v96_v25 = vadd.f32 %v339_v22, %v75_v19  ;;  %s175_s1 = sadd.f32 %s174_s6, %s172_s4  ;;  %s230_s22 = smul.f32 %s481_s19, %s437_s21 }
  0x36   :  { %v158_v27 = vstv %s157_s8  ;;  %s233_s7 = smul.f32 %s499_s12, %s441_s23 }
  0x37   :  { %v105_v28 = vrot.slane %v95_v24, %v519_v21  ;;  %v119_v29 = vrot.slane %v96_v25, %v519_v21  ;;  %v159_v30 = vmul.f32 %v158_v27, %v486_v0  ;;  %s178_s9 = sadd.f32 %s177_s10, %s175_s1  ;;  %v160_v31 = vmul.f32 %v158_v27, %v493_v5  ;;  %s237_s13 = smul.f32 %s511_s17, %s445_s25 }
  0x38   :  { %s234_s21 = sadd.f32 %s233_s7, %s230_s22  ;;  %s243_s23 = smul.f32 %s481_s19, %s447_s26 }
  0x39   :  { %v112_v34 = vrot.slane %v105_v28, %v519_v21  ;;  %v126_v35 = vrot.slane %v119_v29, %v519_v21  ;;  %v349_v36 = vrot.slane %v159_v30, 9  ;;  %v179_v37 = vstv %s178_s9  ;;  %s245_s11 = smul.f32 %s499_s12, %s449_s27 }
  0x3a   :  { %v180_v38 = vmul.f32 %v179_v37, %v486_v0  ;;  %v350_v39 = vrot.slane %v160_v31, 9  ;;  %v181_v40 = vmul.f32 %v179_v37, %v493_v5  ;;  %s238_s25 = sadd.f32 %s237_s13, %s234_s21  ;;  %s248_s24 = smul.f32 %s511_s17, %s451_s28 }
  0x3b   :  { %133 = vst.msk [vmem:[%s604_s3] ss:$4 sm:$0x3] %vm536_vm0, %v112_v34  ;;  %340 = vst.msk [vmem:[%s604_s3 + $0x8] ss:$4 sm:$0x3] %vm536_vm0, %v126_v35  ;;  %v169_v41 = vadd.f32 %v349_v36, %v148_v26  ;;  %s246_s27 = sadd.f32 %s245_s11, %s243_s23  ;;  %s264_s16 = smul.f32 %s481_s19, %s453_s29 }
  0x3c   :  { %v354_v42 = vrot.slane %v180_v38, 10  ;;  %v170_v43 = vadd.f32 %v350_v39, %v149_v33  ;;  %v355_v44 = vrot.slane %v181_v40, 10  ;;  %v239_v45 = vstv %s238_s25  ;;  %s266_s28 = smul.f32 %s499_s12, %s455_s30 }
  0x3d   :  { %s249_s18 = sadd.f32 %s248_s24, %s246_s27  ;;  %s269_s20 = smul.f32 %s511_s17, %s459_s5  ;;  %v240_v48 = vmul.f32 %v239_v45, %v486_v0  ;;  %v241_v54 = vmul.f32 %v239_v45, %v493_v5 }
  0x3e   :  { %v190_v46 = vadd.f32 %v354_v42, %v169_v41  ;;  %v191_v47 = vadd.f32 %v355_v44, %v170_v43  ;;  %s267_s0 = sadd.f32 %s266_s28, %s264_s16 }
  0x3f   :  { %v250_v49 = vstv %s249_s18 }
  0x40   :  { %v200_v50 = vrot.slane %v190_v46, %v519_v21  ;;  %v214_v51 = vrot.slane %v191_v47, %v519_v21  ;;  %v251_v52 = vmul.f32 %v250_v49, %v486_v0  ;;  %s270_s29 = sadd.f32 %s269_s20, %s267_s0  ;;  %v252_v53 = vmul.f32 %v250_v49, %v493_v5 }
  0x42   :  { %v207_v55 = vrot.slane %v200_v50, %v519_v21  ;;  %v221_v56 = vrot.slane %v214_v51, %v519_v21  ;;  %v366_v57 = vrot.slane %v251_v52, 9  ;;  %v271_v58 = vstv %s270_s29 }
  0x43   :  { %v272_v59 = vmul.f32 %v271_v58, %v486_v0  ;;  %v367_v60 = vrot.slane %v252_v53, 9  ;;  %v273_v61 = vmul.f32 %v271_v58, %v493_v5 }
  0x44   :  { %356 = vst.msk [vmem:[%s604_s3 + $0x1] ss:$4 sm:$0x3] %vm536_vm0, %v207_v55  ;;  %357 = vst.msk [vmem:[%s604_s3 + $0x9] ss:$4 sm:$0x3] %vm536_vm0, %v221_v56  ;;  %v261_v62 = vadd.f32 %v366_v57, %v240_v48 }
  0x45   :  { %v371_v63 = vrot.slane %v272_v59, 10  ;;  %v262_v1 = vadd.f32 %v367_v60, %v241_v54  ;;  %v372_v2 = vrot.slane %v273_v61, 10 }
  0x47   :  { %v282_v0 = vadd.f32 %v371_v63, %v261_v62  ;;  %v283_v3 = vadd.f32 %v372_v2, %v262_v1 }
  0x49   :  { %v292_v4 = vrot.slane %v282_v0, %v519_v21  ;;  %v306_v5 = vrot.slane %v283_v3, %v519_v21 }
  0x4b   :  { %v299_v6 = vrot.slane %v292_v4, %v519_v21  ;;  %v313_v7 = vrot.slane %v306_v5, %v519_v21 }
  0x4d   :  { %373 = vst.msk [vmem:[%s604_s3 + $0x2] ss:$4 sm:$0x3] %vm536_vm0, %v299_v6  ;;  %374 = vst.msk [vmem:[%s604_s3 + $0xa] ss:$4 sm:$0x3] %vm536_vm0, %v313_v7 }
  0x4e   :  { %324 = vsyncpa [#allocation3], 1 }
  0x4f   :  { %325 = vsyncpa [#allocation5], 1 }

</bundles_post_ra>
